<compile_context>
chip_gen: v7x
topology: tpu7x:2x2x1
jax: 0.10.0
libtpu: 0.0.40
codegen_flags: <defaults>
</compile_context>

<pallas_src>
import functools
import math

import jax
import jax.numpy as jnp
from jax.experimental import pallas as pl
from jax.experimental.pallas import tpu as pltpu

EPSILON_STD = 1e-06

_HAS_STATEFUL_NORMAL = hasattr(pltpu, "stateful_normal") and hasattr(pltpu, "prng_seed")
_TARGET_TILE_BYTES = 2 * 1024 * 1024  # ~2 MiB/array/buffer: HBM roofline plateau


# ----------------------------------------------------------------------------
# Kernel bodies
# ----------------------------------------------------------------------------
def _scaled_std_f32(z_logvar_f32, epsilon_std):
    # std * epsilon_std == (exp(0.5*lv) + eps) * eps == exp(0.5*lv + ln eps) + eps^2
    # -> only one full-tile multiply left (with the noise).  Done in f32 so the
    #    fused add of log(eps) keeps full mantissa even for bf16 inputs.
    if epsilon_std > 0.0:
        return jnp.exp(0.5 * z_logvar_f32 + math.log(epsilon_std)) + epsilon_std * epsilon_std
    return jnp.zeros_like(z_logvar_f32)


def _sampling_kernel_rng(seed_ref, z_mean_ref, z_logvar_ref, z_ref, *, epsilon_std):
    # Distinct PRNG stream per grid block (seed from SMEM + flattened block id).
    # TODO(synk): per-block seeding means the noise stream depends on tiling,
    # so results are not bit-reproducible across TPU generations/batch sizes.
    blk = pl.program_id(0) * pl.num_programs(1) + pl.program_id(1)
    pltpu.prng_seed(seed_ref[0] + blk)
    noise = pltpu.stateful_normal(z_ref.shape, jnp.float32)  # randn_like
    mean = z_mean_ref[...].astype(jnp.float32)
    logvar = z_logvar_ref[...].astype(jnp.float32)
    z_ref[...] = (mean + _scaled_std_f32(logvar, epsilon_std) * noise).astype(z_ref.dtype)


def _sampling_kernel_eps(z_mean_ref, z_logvar_ref, eps_ref, z_ref, *, epsilon_std):
    # Fallback path: standard-normal noise streamed from HBM (f32).
    mean = z_mean_ref[...].astype(jnp.float32)
    logvar = z_logvar_ref[...].astype(jnp.float32)
    z_ref[...] = (mean + _scaled_std_f32(logvar, epsilon_std) * eps_ref[...]).astype(z_ref.dtype)


# ----------------------------------------------------------------------------
# Tiling helpers
# ----------------------------------------------------------------------------
def _round_up(x, m):
    return ((x + m - 1) // m) * m


def _lane_dense_view(batch, latent):
    # Present a lane-dense slab when latent_dim is not 128-aligned: a row-major
    # reshape is free (contiguous) and avoids masked partial stores.
    if latent % 128 == 0:
        return batch, latent
    total = batch * latent
    for lanes in (2048, 1024, 512, 384, 256, 128):
        if total % lanes == 0:
            return total // lanes, lanes
    return batch, latent  # unaligned width; Pallas masks stores (correct, slower)


def _pick_tile_cols(cols, itemsize):
    # Full-width blocks unless a single 8-row stripe would blow the tile
    # budget; then tile the lane dimension in multiples of 128.
    if cols <= 128 or cols * 8 * itemsize <= _TARGET_TILE_BYTES:
        return cols
    tc = (_TARGET_TILE_BYTES // (8 * itemsize) // 128) * 128
    return max(128, min(tc, cols))


def _pick_tile_rows(rows, row_bytes):
    # ~1-4 MiB tiles, with >=4 grid steps when the batch allows
    # (>=2 per TensorCore on the 2-core v7x; pipeline overlap elsewhere).
    tb = max(8, (_TARGET_TILE_BYTES // max(1, row_bytes)) // 8 * 8)
    if rows >= 32:
        tb = min(tb, max(8, (pl.cdiv(rows, 4) // 8) * 8))
    tb = min(tb, _round_up(rows, 8))
    return max(8, tb)


def _seed_from_key(key):
    # Derive an int32 seed from the key's raw bits: pure bit-slice, no extra
    # XLA RNG dispatch.
    try:
        if jnp.issubdtype(key.dtype, jax.dtypes.prng_key):
            data = jax.random.key_data(key)
        else:
            data = key
    except Exception:
        data = key
    data = jnp.ravel(jnp.asarray(data)).astype(jnp.uint32)
    return jax.lax.bitcast_convert_type(data[0], jnp.int32).reshape(1)


# ----------------------------------------------------------------------------
# Public wrapper
# ----------------------------------------------------------------------------
def sampling(z_mean, z_logvar, key, *, epsilon_std=EPSILON_STD):
    """Pallas TPU implementation of Sampling.forward.

    z_mean, z_logvar: (batch, latent_dim) arrays with identical shape/dtype.
    key:              jax PRNG key controlling the noise draw.
    """
    assert z_mean.shape == z_logvar.shape and z_mean.ndim == 2
    batch, latent_dim = z_mean.shape
    dtype = z_mean.dtype
    itemsize = jnp.dtype(dtype).itemsize

    # Lane-dense slab view (free reshape when latent_dim is unaligned).
    rows, cols = _lane_dense_view(batch, latent_dim)
    zm = z_mean.reshape(rows, cols)
    zl = z_logvar.reshape(rows, cols)

    tc = _pick_tile_cols(cols, itemsize)
    tb = _pick_tile_rows(rows, tc * itemsize)
    grid = (pl.cdiv(rows, tb), pl.cdiv(cols, tc))  # ragged last blocks masked by Pallas

    # `*_` absorbs the scalar-prefetch ref when present.
    spec = pl.BlockSpec((tb, tc), lambda i, j, *_: (i, j))
    out_shape = jax.ShapeDtypeStruct((rows, cols), dtype)
    compiler_params = pltpu.CompilerParams(
        dimension_semantics=("parallel", "parallel"),
    )

    use_rng = _HAS_STATEFUL_NORMAL and jax.default_backend() == "tpu"
    if use_rng:
        # In-kernel hardware PRNG: no HBM round-trip for the noise tensor.
        seed = _seed_from_key(key)
        kernel = functools.partial(_sampling_kernel_rng, epsilon_std=epsilon_std)
        z = pl.pallas_call(
            kernel,
            out_shape=out_shape,
            grid_spec=pltpu.PrefetchScalarGridSpec(
                num_scalar_prefetch=1,
                grid=grid,
                in_specs=[spec, spec],
                out_specs=spec,
            ),
            compiler_params=compiler_params,
        )(seed, zm, zl)
    else:
        # Non-TPU backend (or jax without pltpu.stateful_normal): noise comes
        # from XLA's RNG and is streamed through HBM.
        eps = jax.random.normal(key, (rows, cols), dtype=jnp.float32)
        kernel = functools.partial(_sampling_kernel_eps, epsilon_std=epsilon_std)
        z = pl.pallas_call(
            kernel,
            out_shape=out_shape,
            grid_spec=pltpu.PrefetchScalarGridSpec(
                num_scalar_prefetch=0,
                grid=grid,
                in_specs=[spec, spec, spec],
                out_specs=spec,
            ),
            compiler_params=compiler_params,
        )(zm, zl, eps)

    return z.reshape(batch, latent_dim)


if __name__ == "__main__":
    key = jax.random.PRNGKey(0)
    k_mean, k_logvar, k_eps = jax.random.split(key, 3)

    # Small shapes consistent with the module ("256 dims" latent space).
    batch, latent_dim = 8, 256
    z_mean = jax.random.normal(k_mean, (batch, latent_dim), dtype=jnp.float32)
    z_logvar = jax.random.normal(k_logvar, (batch, latent_dim), dtype=jnp.float32)

    z = sampling(z_mean, z_logvar, k_eps)
    z = jax.block_until_ready(z)

    # Noise may be drawn in-kernel (hardware PRNG), so gate on semantics rather
    # than bit-matching a host RNG stream:
    #   z = z_mean + (exp(0.5*logvar)+eps)*eps*N(0,1)
    # => |z - z_mean| is bounded by a few sigma of (std*eps) and the
    #    normalized residual has roughly unit standard deviation.
    std = jnp.exp(0.5 * z_logvar) + EPSILON_STD
    resid = z - z_mean
    assert z.shape == (batch, latent_dim)
    assert bool(jnp.all(jnp.isfinite(z))), "non-finite output"
    bound = 10.0 * std * EPSILON_STD + 1e-6 * jnp.abs(z_mean) + 1e-6
    assert bool(jnp.all(jnp.abs(resid) <= bound)), "residual exceeds noise bound"
    normalized_sd = float(jnp.std(resid / (std * EPSILON_STD)))
    assert 0.02 < normalized_sd < 50.0, f"noise scale off: {normalized_sd}"

    print("KERNEL_OK")
</pallas_src>

<mosaic_0001>
module attributes {stable_mosaic.version = 11 : i64} {
  func.func @_sampling_kernel_eps(%arg0: i32, %arg1: i32, %arg2: memref<8x256xf32, #tpu.memory_space<vmem>>, %arg3: memref<8x256xf32, #tpu.memory_space<vmem>>, %arg4: memref<8x256xf32, #tpu.memory_space<vmem>>, %arg5: memref<8x256xf32, #tpu.memory_space<vmem>>) attributes {dimension_semantics = [#tpu.dimension_semantics<parallel>, #tpu.dimension_semantics<parallel>], iteration_bounds = array<i64: 1, 1>, scalar_prefetch = 0 : i64, scratch_operands = 0 : i64, tpu.core_type = #tpu.core_type<tc>, window_params = [{transform_indices = @transform_0, window_bounds = array<i64: 8, 256>}, {transform_indices = @transform_1, window_bounds = array<i64: 8, 256>}, {transform_indices = @transform_2, window_bounds = array<i64: 8, 256>}, {transform_indices = @transform_3, window_bounds = array<i64: 8, 256>}]} {
    %c0 = arith.constant 0 : index
    %c0_0 = arith.constant 0 : index
    %0 = vector.load %arg2[%c0, %c0_0] : memref<8x256xf32, #tpu.memory_space<vmem>>, vector<8x256xf32>
    %c0_1 = arith.constant 0 : index
    %c0_2 = arith.constant 0 : index
    %1 = vector.load %arg3[%c0_1, %c0_2] : memref<8x256xf32, #tpu.memory_space<vmem>>, vector<8x256xf32>
    %cst = arith.constant 5.000000e-01 : f32
    %2 = vector.broadcast %cst : f32 to vector<8x256xf32>
    %3 = arith.mulf %2, %1 : vector<8x256xf32>
    %cst_3 = arith.constant -13.8155107 : f32
    %4 = vector.broadcast %cst_3 : f32 to vector<8x256xf32>
    %5 = arith.addf %3, %4 : vector<8x256xf32>
    %6 = math.exp %5 : vector<8x256xf32>
    %cst_4 = arith.constant 9.99999996E-13 : f32
    %7 = vector.broadcast %cst_4 : f32 to vector<8x256xf32>
    %8 = arith.addf %6, %7 : vector<8x256xf32>
    %c0_5 = arith.constant 0 : index
    %c0_6 = arith.constant 0 : index
    %9 = vector.load %arg4[%c0_5, %c0_6] : memref<8x256xf32, #tpu.memory_space<vmem>>, vector<8x256xf32>
    %10 = arith.mulf %8, %9 : vector<8x256xf32>
    %11 = arith.addf %0, %10 : vector<8x256xf32>
    %c0_7 = arith.constant 0 : index
    %c0_8 = arith.constant 0 : index
    %12 = vector.load %arg5[%c0_7, %c0_8] : memref<8x256xf32, #tpu.memory_space<vmem>>, vector<8x256xf32>
    tpu.vector_store %arg5[%c0_7, %c0_8], %11 {strides = array<i32>} : memref<8x256xf32, #tpu.memory_space<vmem>>, vector<8x256xf32>,
    return
  }
  func.func @transform_0(%arg0: i32, %arg1: i32) -> (i32, i32) {
    %c0_i32 = arith.constant 0 : i32
    return %arg0, %arg1 : i32, i32
  }
  func.func @transform_1(%arg0: i32, %arg1: i32) -> (i32, i32) {
    %c0_i32 = arith.constant 0 : i32
    return %arg0, %arg1 : i32, i32
  }
  func.func @transform_2(%arg0: i32, %arg1: i32) -> (i32, i32) {
    %c0_i32 = arith.constant 0 : i32
    return %arg0, %arg1 : i32, i32
  }
  func.func @transform_3(%arg0: i32, %arg1: i32) -> (i32, i32) {
    %c0_i32 = arith.constant 0 : i32
    return %arg0, %arg1 : i32, i32
  }
}

</mosaic_0001>

<bundles_post_ra>
// kernel: tpu_custom_call.1
= control target key start
LH: loop header
LB: loop body
LE: loop exit
PB: predicated region body
PF: predicated region fallthrough
CT: control target
= control target key end

     0   :  { %8 = vsyncpa [#allocation3], 0  ;;  %s262_s0 = inlined_call_operand.hbm [shape: f32[8,256], index: 0, kind: input, shape index: {}]   ;;  %s263_s1 = inlined_call_operand.hbm [shape: f32[8,256], index: 1, kind: input, shape index: {}]   ;;  %s264_s2 = inlined_call_operand.hbm [shape: f32[8,256], index: 2, kind: input, shape index: {}]   ;;  %s265_s3 = inlined_call_operand.hbm [shape: f32[8,256], index: 3, kind: output, shape index: {}]  }
   0x1   :  { %9 = vsyncpa [#allocation6], 0 }
   0x2   :  { %10 = vsyncpa [#allocation4], 0  ;;  %s190_s12 = smov [#allocation5]   ;;  %s191_s14 = smov [#allocation2]  }
   0x3   :  { %s27_s13 = sshll.u32 %s190_s12, 4  ;;  %s17_s15 = sshll.u32 %s191_s14, 4  ;;  %s28_s13 = int_to_ptr.vmem [resolvable:$true] %s27_s13  ;;  %s18_s15 = int_to_ptr.vmem [resolvable:$true] %s17_s15 }
   0x4   :  { %s96_s18 = scalar_lea.hbm %s263_s1, 256 }
   0x5   :  { %p97_p0 = scmp.ne.s32.totalorder %s263_s1, %s96_s18  ;;  %p100_p1 = scmp.lt.u32.totalorder %s96_s18, %s263_s1 }
   0x7   :  { %p102_p2 = pnand %p100_p1, %p97_p0 }
   0x9   :  { %105 = shalt.err (!%p102_p2)
}
   0xa   :  { %s106_s23 = scalar_lea.vmem %s28_s13, 256  ;;  %p111_p4 = scmp.lt.s32.totalorder %s28_s13, %s28_s13 }
   0xb   :  { %p107_p3 = scmp.ne.s32.totalorder %s28_s13, %s106_s23  ;;  %p112_p5 = scmp.lt.s32.totalorder %s106_s23, %s106_s23 }
   0xd   :  { %p113_p6 = por %p112_p5, %p111_p4 }
   0xf   :  { %p114_p7 = pnand %p113_p6, %p107_p3 }
  0x11   :  { %117 = shalt.err (!%p114_p7)
}
  0x12   :  { %30 = dma.hbm_to_vmem [thread:$0]  %s263_s1, 256, %s28_s13, [#allocation6]  }
  0x13   :  { %s118_s28 = scalar_lea.hbm %s262_s0, 256 }
  0x14   :  { %p119_p8 = scmp.ne.s32.totalorder %s262_s0, %s118_s28  ;;  %p122_p9 = scmp.lt.u32.totalorder %s118_s28, %s262_s0 }
  0x16   :  { %p124_p10 = pnand %p122_p9, %p119_p8 }
  0x18   :  { %127 = shalt.err (!%p124_p10)
}
  0x19   :  { %s128_s6 = scalar_lea.vmem %s18_s15, 256  ;;  %p133_p12 = scmp.lt.s32.totalorder %s18_s15, %s18_s15 }
  0x1a   :  { %p129_p11 = scmp.ne.s32.totalorder %s18_s15, %s128_s6  ;;  %p134_p13 = scmp.lt.s32.totalorder %s128_s6, %s128_s6 }
  0x1c   :  { %p135_p0 = por %p134_p13, %p133_p12 }
  0x1e   :  { %p136_p1 = pnand %p135_p0, %p129_p11 }
  0x20   :  { %139 = shalt.err (!%p136_p1)
}
  0x21   :  { %20 = dma.hbm_to_vmem [thread:$0]  %s262_s0, 256, %s18_s15, [#allocation3]  }
  0x22   :  { %s192_s8 = smov [#allocation7]   ;;  %s140_s12 = scalar_lea.hbm %s264_s2, 256 }
  0x23   :  { %s37_s9 = sshll.u32 %s192_s8, 4  ;;  %p141_p2 = scmp.ne.s32.totalorder %s264_s2, %s140_s12  ;;  %s38_s9 = int_to_ptr.vmem [resolvable:$true] %s37_s9 }
  0x24   :  { %p144_p3 = scmp.lt.u32.totalorder %s140_s12, %s264_s2 }
  0x26   :  { %p146_p4 = pnand %p144_p3, %p141_p2 }
  0x28   :  { %149 = shalt.err (!%p146_p4)
}
  0x29   :  { %s150_s18 = scalar_lea.vmem %s38_s9, 256  ;;  %p155_p6 = scmp.lt.s32.totalorder %s38_s9, %s38_s9 }
  0x2a   :  { %p151_p5 = scmp.ne.s32.totalorder %s38_s9, %s150_s18  ;;  %p156_p7 = scmp.lt.s32.totalorder %s150_s18, %s150_s18 }
  0x2c   :  { %p157_p8 = por %p156_p7, %p155_p6 }
  0x2e   :  { %p158_p9 = pnand %p157_p8, %p151_p5 }
  0x30   :  { %161 = shalt.err (!%p158_p9)
}
  0x31   :  { %40 = dma.hbm_to_vmem [thread:$0]  %s264_s2, 256, %s38_s9, [#allocation6]  }
  0x32   :  { %184 = dma.done.wait [#allocation3], 256  }
  0x33   :  { %185 = vsyncadd [#allocation3], 4294967040 }
  0x34   :  { %186 = dma.done.wait [#allocation6], 512  }
  0x35   :  { %187 = vsyncadd [#allocation6], 4294966784  ;;  %v52_v0 = vld [vmem:[#allocation5] sm:$0xff]  ;;  %v53_v2 = vld [vmem:[#allocation5 + $0x8] sm:$0xff]  ;;  %s193_s2 = smov [#allocation8]  }
  0x36   :  { %v54_v1 = vmul.f32 0.5, %v52_v0  ;;  %v55_v3 = vmul.f32 0.5, %v53_v2  ;;  %v64_v9 = vld [vmem:[#allocation7] sm:$0xff]  ;;  %v65_v12 = vld [vmem:[#allocation7 + $0x8] sm:$0xff]  ;;  %s78_s19 = sshll.u32 %s193_s2, 4  ;;  %s79_s19 = int_to_ptr.vmem [resolvable:$true] %s78_s19 }
  0x37   :  { %v50_v13 = vld [vmem:[#allocation2] sm:$0xff]  ;;  %v51_v16 = vld [vmem:[#allocation2 + $0x8] sm:$0xff]  ;;  %s162_s20 = scalar_lea.vmem %s79_s19, 256  ;;  %p167_p11 = scmp.lt.s32.totalorder %s79_s19, %s79_s19 }
  0x38   :  { %v56_v4 = vadd.f32 -13.815511, %v54_v1  ;;  %v57_v5 = vadd.f32 -13.815511, %v55_v3  ;;  %p163_p10 = scmp.ne.s32.totalorder %s79_s19, %s162_s20  ;;  %p168_p12 = scmp.lt.s32.totalorder %s162_s20, %s162_s20 }
  0x3a   :  { %v58_v6 = vmul.f32 1.442695, %v56_v4  ;;  %v60_v7 = vmul.f32 1.442695, %v57_v5  ;;  %p169_p13 = por %p168_p12, %p167_p11 }
  0x3c   :  { %92 = vpow2.f32 %v58_v6  ;;  %p170_p0 = pnand %p169_p13, %p163_p10 }
  0x3d   :  { %94 = vpow2.f32 %v60_v7 }
  0x46   :  { %v93_v8 = vpop.eup %92 }
  0x47   :  { %v95_v10 = vpop.eup %94  ;;  %v62_v11 = vadd.f32 1e-12, %v93_v8 }
  0x48   :  { %v63_v14 = vadd.f32 1e-12, %v95_v10 }
  0x49   :  { %v66_v15 = vmul.f32 %v64_v9, %v62_v11 }
  0x4a   :  { %v67_v17 = vmul.f32 %v65_v12, %v63_v14 }
  0x4b   :  { %v68_v18 = vadd.f32 %v66_v15, %v50_v13 }
  0x4c   :  { %v69_v19 = vadd.f32 %v67_v17, %v51_v16 }
  0x4d   :  { %70 = vst [vmem:[#allocation8] sm:$0xff] %v68_v18 }
  0x4e   :  { %71 = vst [vmem:[#allocation8 + $0x8] sm:$0xff] %v69_v19 }
  0x4f   :  { %173 = shalt.err (!%p170_p0)
}
  0x50   :  { %s174_s23 = scalar_lea.hbm %s265_s3, 256 }
  0x51   :  { %p175_p1 = scmp.ne.s32.totalorder %s265_s3, %s174_s23  ;;  %p178_p2 = scmp.lt.u32.totalorder %s174_s23, %s265_s3 }
  0x53   :  { %p180_p3 = pnand %p178_p2, %p175_p1 }
  0x55   :  { %183 = shalt.err (!%p180_p3)
}
  0x56   :  { %81 = dma.vmem_to_hbm [thread:$0]  %s79_s19, 256, %s265_s3, [#allocation4]  }
  0x57   :  { %188 = dma.done.wait [#allocation4], 256  }
  0x58   :  { %189 = vsyncadd [#allocation4], 4294967040 }
  0x59   :  { %85 = vsyncpa [#allocation3], 1 }
  0x5a   :  { %86 = vsyncpa [#allocation6], 1 }
  0x5b   :  { %87 = vsyncpa [#allocation4], 1 }

</bundles_post_ra>
